<compile_context>
chip_gen: v7x
topology: tpu7x:2x2x1
jax: 0.10.0
libtpu: 0.0.40
codegen_flags: <defaults>
</compile_context>

<pallas_src>
import functools

import jax
import jax.numpy as jnp
from jax.experimental import pallas as pl
from jax.experimental.pallas import tpu as pltpu


_SUBLANES = 8
_LANES = 128


def _row_align(itemsize):
    # Sublane packing granularity: f32 -> 8, bf16/f16 -> 16, 8-bit -> 32.
    return {4: 8, 2: 16, 1: 32}.get(int(itemsize), 8)


def _choose_tile_rows(H, W, pred_dtype, gt_dtype, target_bytes):
    """Pick an H-tile so one (pred + gt) block is ~target_bytes."""
    bpr = W * (jnp.dtype(pred_dtype).itemsize + jnp.dtype(gt_dtype).itemsize)
    align = max(_row_align(jnp.dtype(pred_dtype).itemsize),
                _row_align(jnp.dtype(gt_dtype).itemsize))
    if H * bpr <= target_bytes or H <= align:
        return H                           # full dim is always a legal block
    th = min(H, max(1, target_bytes // bpr))
    th = max(align, (th // align) * align)
    return min(th, H)


def _tile_mask(gt_f32, h_idx, tile_rows, h_total, need_row_mask):
    """gt > 0 mask, with out-of-bounds rows of a ragged last tile excluded."""
    mask = gt_f32 > 0.0
    if need_row_mask:
        row = (jax.lax.broadcasted_iota(jnp.int32, gt_f32.shape, 0)
               + h_idx * tile_rows)
        mask = jnp.logical_and(mask, row < h_total)
    return mask


def _max_kernel(pred_ref, gt_ref, out_ref, *,
                h_total, tile_rows, need_row_mask):
    """Pass 1: masked max of |pred - gt| for one (sample, H-tile)."""
    pred = pred_ref[...].astype(jnp.float32)          # (tile_rows, W)
    gt = gt_ref[...].astype(jnp.float32)
    mask = _tile_mask(gt, pl.program_id(1), tile_rows, h_total, need_row_mask)
    err = jnp.abs(pred - gt)
    tile_max = jnp.max(jnp.where(mask, err, -jnp.inf))
    # Lane-dense (8,128) partial block; every element holds the tile max.
    out_ref[...] = jnp.full(out_ref.shape, tile_max, out_ref.dtype)


def _sum_kernel(c_ref, pred_ref, gt_ref, sum_ref, cnt_ref, *,
                h_total, tile_rows, need_row_mask):
    """Pass 2: masked berhu sum and masked count for one (sample, H-tile)."""
    pred = pred_ref[...].astype(jnp.float32)
    gt = gt_ref[...].astype(jnp.float32)
    mask = _tile_mask(gt, pl.program_id(1), tile_rows, h_total, need_row_mask)
    err = jnp.abs(pred - gt)

    c = c_ref[0]         # delta * global masked max
    c_sq = c_ref[1]      # c^2            (hoisted in wrapper)
    inv_2c = c_ref[2]    # 1 / (2c)       (hoisted divide)

    # Masked-out elements get err_m = 0 -> never exceed c (c >= 0) -> they
    # contribute 0, so one extra select implements both the berhu branch and
    # the mask zeroing.
    err_m = jnp.where(mask, err, 0.0)
    sq = (err_m * err_m + c_sq) * inv_2c
    vals = jnp.where(err_m > c, sq, err_m)

    sum_ref[...] = jnp.full(sum_ref.shape, jnp.sum(vals), sum_ref.dtype)
    cnt_ref[...] = jnp.full(cnt_ref.shape,
                            jnp.sum(mask.astype(jnp.float32)), cnt_ref.dtype)


def berhu_loss(prediction, gt, delta=0.05, *,
               block_rows=None, target_block_bytes=4 << 20):
    """Berhu loss.  prediction: (N, C, H, W); gt: (N, 1, H, W) or (N, H, W)."""
    assert prediction.ndim == 4, prediction.shape
    if gt.ndim == 3:
        gt = gt[:, None]
    N, C, H, W = prediction.shape
    assert gt.shape == (N, 1, H, W), (gt.shape, prediction.shape)

    align = max(_row_align(jnp.dtype(prediction.dtype).itemsize),
                _row_align(jnp.dtype(gt.dtype).itemsize))
    if block_rows is None:
        th = _choose_tile_rows(H, W, prediction.dtype, gt.dtype,
                               target_block_bytes)
    else:
        th = min(H, max(align, (int(block_rows) // align) * align))
    n_h = pl.cdiv(H, th)
    need_row_mask = (H % th) != 0

    grid = (N, n_h)

    # Channel block index pinned to 0 => prediction[:, 0:1] is realized by the
    # DMA itself; channels 1..C-1 never leave HBM.
    pred_spec = pl.BlockSpec((None, None, th, W), lambda n, h: (n, 0, h, 0))
    gt_spec = pl.BlockSpec((None, None, th, W), lambda n, h: (n, 0, h, 0))

    # Per-grid-point partials, written as full lane-dense (8,128) blocks so
    # every grid axis can be "parallel" (megacore-safe, unmasked stores).
    partial_spec = pl.BlockSpec((None, None, _SUBLANES, _LANES),
                                lambda n, h: (n, h, 0, 0))
    partial_shape = jax.ShapeDtypeStruct((N, n_h, _SUBLANES, _LANES),
                                         jnp.float32)

    cparams = pltpu.CompilerParams(
        dimension_semantics=("parallel", "parallel"),
        vmem_limit_bytes=32 * 1024 * 1024,
    )
    static = dict(h_total=H, tile_rows=th, need_row_mask=need_row_mask)

    # ---- pass 1: per-tile masked max -> c ----
    partial_max = pl.pallas_call(
        functools.partial(_max_kernel, **static),
        out_shape=partial_shape,
        grid=grid,
        in_specs=[pred_spec, gt_spec],
        out_specs=partial_spec,
        compiler_params=cparams,
    )(prediction, gt)

    c = jnp.float32(delta) * jnp.max(partial_max)
    c_params = jnp.stack([c, c * c, 1.0 / (2.0 * c)]).astype(jnp.float32)

    # ---- pass 2: per-tile masked berhu sum and count given c ----
    partial_sum, partial_cnt = pl.pallas_call(
        functools.partial(_sum_kernel, **static),
        out_shape=(partial_shape, partial_shape),
        grid=grid,
        in_specs=[pl.BlockSpec(memory_space=pltpu.SMEM), pred_spec, gt_spec],
        out_specs=(partial_spec, partial_spec),
        compiler_params=cparams,
    )(c_params, prediction, gt)

    total = jnp.sum(partial_sum[:, :, 0, 0])
    count = jnp.sum(partial_cnt[:, :, 0, 0])
    return total / count   # mean over masked elements


def berhu_loss_ref(prediction, gt, delta=0.05):
    """Pure-JAX reference mirroring the PyTorch forward."""
    if gt.ndim == 3:
        gt = gt[:, None]
    pred = prediction[:, 0:1].astype(jnp.float32)
    gt = gt.astype(jnp.float32)
    err = jnp.abs(pred - gt)
    mask = gt > 0.0
    c = delta * jnp.max(jnp.where(mask, err, -jnp.inf))
    sq = (err * err + c * c) / (2.0 * c)
    vals = jnp.where(err > c, sq, err)
    vals = jnp.where(mask, vals, 0.0)
    return jnp.sum(vals) / jnp.sum(mask.astype(jnp.float32))


if __name__ == "__main__":
    key = jax.random.PRNGKey(0)
    k1, k2, k3, k4 = jax.random.split(key, 4)

    # Small test consistent with the module's forward (NCHW, gt single-channel).
    N, C, H, W = 2, 4, 16, 16
    prediction = jax.random.normal(k1, (N, C, H, W), dtype=jnp.float32)
    # gt ~ normal: roughly half the elements are > 0, exercising the mask.
    gt = jax.random.normal(k2, (N, 1, H, W), dtype=jnp.float32)

    loss = jax.block_until_ready(berhu_loss(prediction, gt, delta=0.05))
    ref = berhu_loss_ref(prediction, gt, delta=0.05)
    assert jnp.allclose(loss, ref, rtol=1e-5, atol=1e-6), (loss, ref)

    # bf16 prediction + larger spatial dims: default (full-H-tile) path.
    N2, C2, H2, W2 = 2, 4, 300, 640
    pred2 = jax.random.normal(k3, (N2, C2, H2, W2), dtype=jnp.bfloat16)
    gt2 = jax.random.normal(k4, (N2, 1, H2, W2), dtype=jnp.float32)

    loss2 = jax.block_until_ready(berhu_loss(pred2, gt2, delta=0.05))
    ref2 = berhu_loss_ref(pred2, gt2, delta=0.05)
    assert jnp.allclose(loss2, ref2, rtol=1e-4, atol=1e-6), (loss2, ref2)

    # Forced small H-tile: exercises the multi-tile grid and the ragged
    # last-tile row mask (300 = 2*128 + 44).
    loss3 = jax.block_until_ready(
        berhu_loss(pred2, gt2, delta=0.05, block_rows=128))
    assert jnp.allclose(loss3, ref2, rtol=1e-4, atol=1e-6), (loss3, ref2)

    print("KERNEL_OK")
</pallas_src>

<mosaic_0001>
module attributes {stable_mosaic.version = 11 : i64} {
  func.func @_max_kernel(%arg0: i32, %arg1: i32, %arg2: memref<1x1x16x16xf32, #tpu.memory_space<vmem>>, %arg3: memref<1x1x16x16xf32, #tpu.memory_space<vmem>>, %arg4: memref<1x1x8x128xf32, #tpu.memory_space<vmem>>) attributes {dimension_semantics = [#tpu.dimension_semantics<parallel>, #tpu.dimension_semantics<parallel>], iteration_bounds = array<i64: 2, 1>, scalar_prefetch = 0 : i64, scratch_operands = 0 : i64, tpu.core_type = #tpu.core_type<tc>, window_params = [{transform_indices = @transform_0, window_bounds = array<i64: 1, 1, 16, 16>}, {transform_indices = @transform_1, window_bounds = array<i64: 1, 1, 16, 16>}, {transform_indices = @transform_2, window_bounds = array<i64: 1, 1, 8, 128>}]} {
    %c0 = arith.constant 0 : index
    %c0_0 = arith.constant 0 : index
    %c0_1 = arith.constant 0 : index
    %c0_2 = arith.constant 0 : index
    %0 = vector.load %arg2[%c0, %c0_0, %c0_1, %c0_2] : memref<1x1x16x16xf32, #tpu.memory_space<vmem>>, vector<1x1x16x16xf32>
    %1 = vector.shape_cast %0 : vector<1x1x16x16xf32> to vector<16x16xf32>
    %c0_3 = arith.constant 0 : index
    %c0_4 = arith.constant 0 : index
    %c0_5 = arith.constant 0 : index
    %c0_6 = arith.constant 0 : index
    %2 = vector.load %arg3[%c0_3, %c0_4, %c0_5, %c0_6] : memref<1x1x16x16xf32, #tpu.memory_space<vmem>>, vector<1x1x16x16xf32>
    %3 = vector.shape_cast %2 : vector<1x1x16x16xf32> to vector<16x16xf32>
    %cst = arith.constant 0.000000e+00 : f32
    %4 = vector.broadcast %cst : f32 to vector<16x16xf32>
    %5 = arith.cmpf ogt, %3, %4 : vector<16x16xf32>
    %6 = arith.subf %1, %3 : vector<16x16xf32>
    %7 = math.absf %6 : vector<16x16xf32>
    %cst_7 = arith.constant 0xFF800000 : f32
    %8 = vector.broadcast %cst_7 : f32 to vector<16x16xf32>
    %9 = arith.select %5, %7, %8 : vector<16x16xi1>, vector<16x16xf32>
    %10 = vector.shape_cast %9 : vector<16x16xf32> to vector<1x16x16xf32>
    %cst_8 = arith.constant dense<0xFF800000> : vector<1xf32>
    %11 = vector.multi_reduction <maximumf>, %10, %cst_8 [1, 2] : vector<1x16x16xf32> to vector<1xf32>
    %12 = vector.shape_cast %11 : vector<1xf32> to vector<1x1x1xf32>
    %13 = vector.extract %12[0, 0, 0] : f32 from vector<1x1x1xf32>
    %14 = vector.broadcast %13 : f32 to vector<8x128xf32>
    %c0_9 = arith.constant 0 : index
    %c0_10 = arith.constant 0 : index
    %c0_11 = arith.constant 0 : index
    %c0_12 = arith.constant 0 : index
    %15 = vector.load %arg4[%c0_9, %c0_10, %c0_11, %c0_12] : memref<1x1x8x128xf32, #tpu.memory_space<vmem>>, vector<1x1x8x128xf32>
    %16 = vector.shape_cast %15 : vector<1x1x8x128xf32> to vector<8x128xf32>
    %17 = vector.shape_cast %14 : vector<8x128xf32> to vector<1x1x8x128xf32>
    tpu.vector_store %arg4[%c0_9, %c0_10, %c0_11, %c0_12], %17 {strides = array<i32>} : memref<1x1x8x128xf32, #tpu.memory_space<vmem>>, vector<1x1x8x128xf32>,
    return
  }
  func.func @transform_0(%arg0: i32, %arg1: i32) -> (i32, i32, i32, i32) {
    %c0_i32 = arith.constant 0 : i32
    %c0_i32_0 = arith.constant 0 : i32
    %c0_i32_1 = arith.constant 0 : i32
    return %arg0, %c0_i32, %arg1, %c0_i32_0 : i32, i32, i32, i32
  }
  func.func @transform_1(%arg0: i32, %arg1: i32) -> (i32, i32, i32, i32) {
    %c0_i32 = arith.constant 0 : i32
    %c0_i32_0 = arith.constant 0 : i32
    %c0_i32_1 = arith.constant 0 : i32
    return %arg0, %c0_i32, %arg1, %c0_i32_0 : i32, i32, i32, i32
  }
  func.func @transform_2(%arg0: i32, %arg1: i32) -> (i32, i32, i32, i32) {
    %c0_i32 = arith.constant 0 : i32
    %c0_i32_0 = arith.constant 0 : i32
    %c0_i32_1 = arith.constant 0 : i32
    return %arg0, %arg1, %c0_i32, %c0_i32_0 : i32, i32, i32, i32
  }
}

</mosaic_0001>

<bundles_post_ra>
// kernel: tpu_custom_call.1
= control target key start
LH: loop header
LB: loop body
LE: loop exit
PB: predicated region body
PF: predicated region fallthrough
CT: control target
= control target key end

     0   :  { %7 = vsyncpa [#allocation3], 0  ;;  %s867_s0 = inlined_call_operand.hbm [shape: f32[2,4,16,16], index: 0, kind: input, shape index: {}]   ;;  %s868_s1 = inlined_call_operand.hbm [shape: f32[2,1,16,16], index: 1, kind: input, shape index: {}]   ;;  %s869_s2 = inlined_call_operand.hbm [shape: f32[2,1,8,128], index: 2, kind: output, shape index: {}]  }
   0x1   :  { %9 = vsyncpa [#allocation3 + $0x1], 0 }
   0x2   :  { %10 = vsyncpa [#allocation6], 0 }
   0x3   :  { %12 = vsyncpa [#allocation6 + $0x1], 0 }
   0x4   :  { %13 = vsyncpa [#allocation4], 0 }
   0x5   :  { %15 = vsyncpa [#allocation4 + $0x1], 0  ;;  %s635_s9 = smov 0   ;;  %s637_s10 = smov 0  }
   0x6   :  { %s639_s11 = smov 0   ;;  %s641_s12 = smov 0  }
   0x7   :  { %s643_s13 = smov 0   ;;  %s645_s14 = smov 0  }
   0x8 LB: > { %s376_s15 = sadd.s32 4294967295, %s613_s14   ;;  %s377_s16 = sadd.s32 4294967294, %s613_s14   ;;  %s613_s14 = sphi %s645_s14, %s21_s14   ;;  %s609_s13 = sphi %s643_s13, %s887_s13   ;;  %s605_s12 = sphi %s641_s12, %s886_s12   ;;  %s601_s11 = sphi %s639_s11, %s885_s11   ;;  %s597_s10 = sphi %s637_s10, %s884_s10   ;;  %s593_s9 = sphi %s635_s9, %s883_s9  }
   0x9   : > { %s33_s17 = sadd.s32 1, %s609_s13  ;;  %s42_s18 = sadd.s32 1, %s601_s11 }
   0xa   : > { %p35_p0 = scmp.ge.s32.totalorder %s33_s17, 2  ;;  %p49_p1 = scmp.ne.s32.totalorder %s601_s11, %s597_s10 }
   0xb   : > { %p50_p2 = scmp.eq.s32.totalorder %s613_s14, 0  ;;  %p55_p3 = scmp.ne.s32.totalorder %s597_s10, %s593_s9 }
   0xc   : > { %s889_s17 = smov (%p35_p0, %s33_s17), 0  ;;  %p56_p5 = scmp.eq.s32.totalorder %s376_s15, 0 }
   0xd   : > { %p676_p4 = por %p50_p2, %p49_p1  ;;  %s37_s20 = ssub.s32 %s609_s13, %s889_s17 }
   0xe   : > { %p109_p6 = scmp.eq.s32.totalorder %s376_s15, 1  ;;  %p40_p7 = scmp.eq.s32.totalorder %s37_s20, 0 }
   0xf   : > { %p682_p8 = por %p56_p5, %p55_p3  ;;  %p115_p10 = scmp.eq.s32.totalorder %s377_s16, 1 }
  0x10   : > { %p686_p9 = por %p109_p6, %p49_p1  ;;  %p415_p13 = scmp.lt.s32.totalorder %s613_s14, 2 }
  0x11   : > { %s873_s21 = scalar_select %p682_p8, 1, 0 }
  0x12   : > { %s874_s22 = scalar_select %p686_p9, 1, 0 }
  0x13   : > { %s691_s23 = scalar_select %p40_p7, %s601_s11, %s42_s18  }
  0x14   : > { %p693_p11 = por %p115_p10, %p55_p3  ;;  %s700_s25 = sand.u32 1, %s601_s11  }
  0x15   : > { %s380_s26 = sshll.u32 %s700_s25, 4  ;;  %s394_s27 = sshll.u32 %s609_s13, 10 }
  0x16   : > { %s875_s24 = scalar_select %p693_p11, 1, 0 }
  0x17   : > { %s707_s30 = scalar_lea.hbm %s867_s0, %s394_s27  ;;  %s139_s3 = scalar_lea.vmem [#allocation2], %s380_s26 }
  0x18   : > { %s148_s4 = sshll.u32 %s139_s3, 4  ;;  %p715_p0 = pnand %p415_p13, %p676_p4  ;;  %s711_s4 = int_to_ptr.vmem [resolvable:$true] %s148_s4 }
  0x19   : > { %s136_s6 = scalar_lea.sflag [#allocation3], %s700_s25  ;;  %s467_s7 = scalar_lea.hbm %s707_s30, 256 }
  0x1a   : > { %p468_p2 = scmp.ne.s32.totalorder %s707_s30, %s467_s7  ;;  %p469_p3 = pneg %p715_p0 }
  0x1b   : > { %s472_s16 = scalar_lea.hbm %s867_s0, 2048  ;;  %p473_p4 = scmp.lt.u32.totalorder %s707_s30, %s867_s0 }
  0x1c   : > { %p470_p5 = pnand %p469_p3, %p468_p2  ;;  %p474_p7 = scmp.lt.u32.totalorder %s472_s16, %s467_s7 }
  0x1d   : > { %p476_p13 = scmp.lt.u32.totalorder %s467_s7, %s707_s30 }
  0x1e   : > { %p471_p6 = pneg %p470_p5  ;;  %p475_p10 = por %p474_p7, %p473_p4 }
  0x20   : > { %p477_p12 = por %p476_p13, %p475_p10 }
  0x22   : > { %p478_p1 = pnand %p477_p12, %p471_p6 }
  0x24   : > { %481 = shalt.err (!%p478_p1)
}
  0x25   : > { %s482_s20 = scalar_lea.vmem %s711_s4, 256  ;;  %s615_s27 = smov [#allocation2]  }
  0x26   : > { %p483_p2 = scmp.ne.s32.totalorder %s711_s4, %s482_s20  ;;  %s487_s28 = sshll.u32 %s615_s27, 4  ;;  %s488_s28 = int_to_ptr.vmem [resolvable:$false] %s487_s28 }
  0x27   : > { %s489_s29 = scalar_lea.vmem %s488_s28, 512  ;;  %p490_p9 = scmp.lt.s32.totalorder %s711_s4, %s488_s28 }
  0x28   : > { %p485_p5 = pnand %p483_p2, %p469_p3  ;;  %p491_p4 = scmp.lt.s32.totalorder %s489_s29, %s482_s20 }
  0x2a   : > { %p486_p11 = pneg %p485_p5  ;;  %p492_p7 = por %p491_p4, %p490_p9 }
  0x2c   : > { %p493_p10 = pnand %p492_p7, %p486_p11 }
  0x2e   : > { %496 = shalt.err (!%p493_p10)
}
  0x2f   : > { %s616_s3 = smov 128   ;;  %s617_s7 = smov 8  }
  0x30   : > { %407 = dma.hbm_to_vmem [thread:$0]  (!%p715_p0), %s707_s30, 256, %s711_s4, %s136_s6, %s616_s3, %s616_s3, %s617_s7  }
  0x31   : > { %p179_p9 = scmp.lt.s32.totalorder %s613_s14, 3  ;;  %s395_s8 = sshll.u32 %s609_s13, 8 }
  0x32   : > { %p877_p11 = scmp.ge.s32.totalorder %s613_s14, 1  ;;  %s762_s19 = scalar_lea.hbm %s868_s1, %s395_s8 }
  0x33   : > { %s162_s20 = scalar_lea.vmem [#allocation5], %s380_s26  ;;  %s159_s30 = scalar_lea.sflag [#allocation6], %s700_s25 }
  0x34   : > { %p755_p12 = pnand %p877_p11, %p179_p9  ;;  %s171_s27 = sshll.u32 %s162_s20, 4  ;;  %s766_s27 = int_to_ptr.vmem [resolvable:$true] %s171_s27 }
  0x35   : > { %s497_s4 = scalar_lea.hbm %s762_s19, 256  ;;  %s502_s29 = scalar_lea.hbm %s868_s1, 512 }
  0x36   : > { %p498_p1 = scmp.ne.s32.totalorder %s762_s19, %s497_s4  ;;  %p503_p2 = scmp.lt.u32.totalorder %s762_s19, %s868_s1 }
  0x37   : > { %p504_p5 = scmp.lt.u32.totalorder %s502_s29, %s497_s4  ;;  %p506_p7 = scmp.lt.u32.totalorder %s497_s4, %s762_s19 }
  0x38   : > { %p500_p6 = pnand %p498_p1, %p469_p3 }
  0x39   : > { %p505_p4 = por %p504_p5, %p503_p2 }
  0x3a   : > { %p501_p13 = pneg %p500_p6 }
  0x3b   : > { %p507_p10 = por %p506_p7, %p505_p4 }
  0x3d   : > { %p508_p9 = pnand %p507_p10, %p501_p13 }
  0x3f   : > { %511 = shalt.err (!%p508_p9)
}
  0x40   : > { %s512_s26 = scalar_lea.vmem %s766_s27, 256  ;;  %s618_s18 = smov [#allocation5]  }
  0x41   : > { %p513_p11 = scmp.ne.s32.totalorder %s766_s27, %s512_s26  ;;  %s517_s20 = sshll.u32 %s618_s18, 4  ;;  %s518_s20 = int_to_ptr.vmem [resolvable:$false] %s517_s20 }
  0x42   : > { %s519_s6 = scalar_lea.vmem %s518_s20, 512  ;;  %p520_p8 = scmp.lt.s32.totalorder %s766_s27, %s518_s20 }
  0x43   : > { %p515_p1 = pnand %p513_p11, %p469_p3  ;;  %p521_p2 = scmp.lt.s32.totalorder %s519_s6, %s512_s26 }
  0x45   : > { %p516_p6 = pneg %p515_p1  ;;  %p522_p5 = por %p521_p2, %p520_p8 }
  0x47   : > { %p523_p4 = pnand %p522_p5, %p516_p6 }
  0x49   : > { %526 = shalt.err (!%p523_p4)
}
  0x4a   : > { %410 = dma.hbm_to_vmem [thread:$0]  (!%p715_p0), %s762_s19, 256, %s766_s27, %s159_s30, %s616_s3, %s616_s3, %s617_s7  }
  0x4b   : > { %183 = sbr.rel (%p755_p12) target bundleno = 314 (0x13a), region = 28  ;;  %s800_s4 = sand.u32 (!%p755_p12), 1, %s597_s10  }
  0x4c   : > { %s387_s28 = sshll.u32 (!%p755_p12), %s800_s4, 4  ;;  %s186_s29 = scalar_lea.sflag (!%p755_p12), [#allocation3], %s800_s4 }
  0x4d   : > { %s189_s5 = scalar_lea.vmem (!%p755_p12), [#allocation2], %s387_s28  ;;  %p879_p8 = scmp.ne.s32.totalorder (!%p755_p12), %s873_s21, 0 }
  0x52   : > { %580 = dma.done.wait (%p879_p8), %s186_s29, 256  }
  0x53   : > { %582 = vsyncadd (%p879_p8), %s186_s29, 4294967040  ;;  %s195_s25 = scalar_lea.sflag [#allocation6], %s800_s4  ;;  %s198_s3 = scalar_lea.vmem [#allocation5], %s387_s28 }
  0x54   : > { %584 = dma.done.wait (%p879_p8), %s195_s25, 256  }
  0x55   : > { %586 = vsyncadd (%p879_p8), %s195_s25, 4294967040  ;;  %v226_v0 = vld [vmem:[%s189_s5] sm:$0xff]  ;;  %v227_v1 = vld [vmem:[%s189_s5 + $0x8] sm:$0xff]  ;;  %vm238_vm2 = vcmask 130048   ;;  %s389_s21 = sshll.u32 %s800_s4, 3  ;;  %s391_s19 = sshll.u32 %s605_s12, 7 }
  0x56   : > { %v228_v2 = vld [vmem:[%s198_s3] sm:$0xff]  ;;  %v229_v3 = vld [vmem:[%s198_s3 + $0x8] sm:$0xff]  ;;  %s223_s7 = scalar_lea.vmem [#allocation7], %s389_s21  ;;  %s820_s16 = scalar_lea.hbm %s869_s2, %s391_s19 }
  0x57   : > { %v232_v4 = vsub.f32 %v226_v0, %v228_v2  ;;  %vm230_vm0 = vcmp.gt.f32.partialorder %v228_v2, 0.0  ;;  %v233_v5 = vsub.f32 %v227_v1, %v229_v3  ;;  %vm231_vm1 = vcmp.gt.f32.partialorder %v229_v3, 0.0  ;;  %s268_s15 = sshll.u32 %s223_s7, 4  ;;  %s254_s26 = scalar_lea.sflag [#allocation4], %s800_s4  ;;  %s815_s15 = int_to_ptr.vmem [resolvable:$true] %s268_s15 }
  0x58   : > { %s527_s18 = scalar_lea.vmem %s815_s15, 128  ;;  %p880_p3 = scmp.ne.s32.totalorder %s874_s22, 0 }
  0x59   : > { %v234_v6 = vand.u32 2147483647, %v232_v4  ;;  %v235_v7 = vand.u32 2147483647, %v233_v5  ;;  %p528_p0 = scmp.ne.s32.totalorder %s815_s15, %s527_s18  ;;  %s619_s12 = smov [#allocation7]  }
  0x5a   : > { %s531_s20 = sshll.u32 %s619_s12, 4  ;;  %s532_s20 = int_to_ptr.vmem [resolvable:$false] %s531_s20 }
  0x5b   : > { %v236_v8 = vsel %vm230_vm0, %v234_v6, -inf  ;;  %v237_v9 = vsel %vm231_vm1, %v235_v7, -inf  ;;  %p529_p12 = pnand %p528_p0, %p880_p3  ;;  %s533_s6 = scalar_lea.vmem %s532_s20, 256 }
  0x5c   : > { %v239_v10 = vsel %vm238_vm2, %v236_v8, -inf  ;;  %v240_v11 = vsel %vm238_vm2, %v237_v9, -inf  ;;  %p534_p7 = scmp.lt.s32.totalorder %s815_s15, %s532_s20  ;;  %p535_p10 = scmp.lt.s32.totalorder %s533_s6, %s527_s18 }
  0x5d   : > { %v241_v12 = vmax.f32 %v239_v10, %v240_v11  ;;  %p530_p13 = pneg %p529_p12 }
  0x5e   : > { %p536_p9 = por %p535_p10, %p534_p7 }
  0x5f   : > { %242 = vmax.xlane.f32.xlu0 %v241_v12 }
  0x60   : > { %p537_p11 = pnand %p536_p9, %p530_p13 }
  0xec   : > { %v243_v13 = vpop.xlane.xlu0 %242 }
  0xed   : > { %v244_v14 = vrot.slane %v243_v13, 4 }
  0xef   : > { %v245_v15 = vmax.f32 %v243_v13, %v244_v14 }
  0xf1   : > { %v246_v16 = vrot.slane %v245_v15, 2 }
  0xf3   : > { %v247_v17 = vmax.f32 %v245_v15, %v246_v16 }
  0xf5   : > { %v248_v18 = vrot.slane %v247_v17, 1 }
  0xf7   : > { %v249_v19 = vmax.f32 %v247_v17, %v248_v18 }
  0xf9   : > { %396 = vpush %v249_v19 }
 0x12a   : > { %s397_s27 = spop %396 }
 0x12b   : > { %v251_v20 = vstv %s397_s27 }
 0x12c   : > { %252 = vst [vmem:[%s223_s7] sm:$0xff] %v251_v20 }
 0x12d   : > { %540 = shalt.err (!%p537_p11)
}
 0x12e   : > { %s541_s4 = scalar_lea.hbm %s820_s16, 128  ;;  %s545_s5 = scalar_lea.hbm %s869_s2, 256 }
 0x12f   : > { %p542_p1 = scmp.ne.s32.totalorder %s820_s16, %s541_s4  ;;  %p546_p5 = scmp.lt.u32.totalorder %s820_s16, %s869_s2 }
 0x130   : > { %p547_p4 = scmp.lt.u32.totalorder %s545_s5, %s541_s4  ;;  %p549_p0 = scmp.lt.u32.totalorder %s541_s4, %s820_s16 }
 0x131   : > { %p543_p6 = pnand %p542_p1, %p880_p3 }
 0x132   : > { %p548_p8 = por %p547_p4, %p546_p5 }
 0x133   : > { %p544_p2 = pneg %p543_p6 }
 0x134   : > { %p550_p12 = por %p549_p0, %p548_p8 }
 0x136   : > { %p551_p13 = pnand %p550_p12, %p544_p2 }
 0x138   : > { %554 = shalt.err (!%p551_p13)
}
 0x139   : > { %402 = dma.vmem_to_hbm [thread:$0]  (%p880_p3), %s815_s15, 128, %s820_s16, %s254_s26  }
 0x13a PF: > { %s280_s21 = sand.u32 1, %s593_s9   ;;  %p881_p7 = scmp.ne.s32.totalorder %s875_s24, 0 }
 0x13b   : > { %p882_p10 = scmp.ge.s32.totalorder %s613_s14, 2  ;;  %s281_s7 = scalar_lea.sflag [#allocation4], %s280_s21 }
 0x13d   : > { %p412_p9 = pnand %p882_p10, %p881_p7 }
 0x13f   : > { %588 = dma.done.wait (!%p412_p9), %s281_s7, 128  }
 0x140   : > { %590 = vsyncadd (!%p412_p9), %s281_s7, 4294967168  ;;  %s21_s14 = sadd.s32 1, %s613_s14   ;;  %s883_s9 = smov %s597_s10 }
 0x141   : > { %p18_p11 = scmp.ge.s32.totalorder %s21_s14, 4   ;;  %s884_s10 = smov %s601_s11 }
 0x142   : > { %s885_s11 = smov %s691_s23  ;;  %s886_s12 = smov %s609_s13 }
 0x143   : > { %s887_s13 = smov %s889_s17  ;;  %20 = sbr.rel (!%p18_p11) target bundleno = 8 (0x8), region = 86 }
 0x14a   :  { %286 = vsyncpa [#allocation3], 1 }
 0x14b   :  { %288 = vsyncpa [#allocation3 + $0x1], 1 }
 0x14c   :  { %289 = vsyncpa [#allocation6], 1 }
 0x14d   :  { %291 = vsyncpa [#allocation6 + $0x1], 1 }
 0x14e   :  { %292 = vsyncpa [#allocation4], 1 }
 0x14f   :  { %294 = vsyncpa [#allocation4 + $0x1], 1 }

</bundles_post_ra>
